<compile_context>
chip_gen: v6e
topology: v6e:2x2x1
jax: 0.10.0
libtpu: 0.0.40
codegen_flags: <defaults>
</compile_context>

<pallas_src>
import functools

import jax
import jax.numpy as jnp
import numpy as np
from jax.experimental import pallas as pl
from jax.experimental.pallas import tpu as pltpu

EPS = 1e-5
_SQRT2_INV = 0.7071067811865476


def _gelu(x):
    # exact (erf) GELU, matching torch.nn.GELU() default
    return 0.5 * x * (1.0 + jax.lax.erf(x * _SQRT2_INV))


def _round_up(v, m):
    return (v + m - 1) // m * m


# ---------------------------------------------------------------------------
# host-side constants
# ---------------------------------------------------------------------------
def _interp_matrix(in_size, out_size):
    """(out, in) 1-D linear interpolation matrix, align_corners=True."""
    A = np.zeros((out_size, in_size), dtype=np.float32)
    if in_size == 1:
        A[:, 0] = 1.0
        return A
    s = np.arange(out_size, dtype=np.float64) * (in_size - 1) / (out_size - 1)
    i0 = np.clip(np.floor(s).astype(np.int64), 0, in_size - 2)
    frac = (s - i0).astype(np.float32)
    A[np.arange(out_size), i0] += 1.0 - frac
    A[np.arange(out_size), i0 + 1] += frac
    return A


def _upsample_matrix_T(H, W, Ho, Wo, N):
    """(N*H*W, N*Ho*Wo) block-diagonal matrix; with the batch folded onto the
    lane axis ((C, N*H*W), n-major / row-major spatial): up2d = x2d @ UT."""
    U = np.kron(_interp_matrix(H, Ho), _interp_matrix(W, Wo))   # (Ho*Wo, H*W)
    return jnp.asarray(np.kron(np.eye(N, dtype=np.float32), U.T))


# ---------------------------------------------------------------------------
# pltpu.roll direction probe (one tiny kernel, run once; makes the tap-shift
# sign robust across jax versions / rotate-op conventions)
# ---------------------------------------------------------------------------
_ROLL_SIGN = None


def _roll_sign():
    """Returns s such that pltpu.roll(v, (s*k) % n, axis)[..., i] == v[..., (i+k) % n]."""
    global _ROLL_SIGN
    if _ROLL_SIGN is None:
        def _probe(x_ref, o_ref):
            o_ref[...] = pltpu.roll(x_ref[...], 1, axis=1)

        x = jnp.tile(jax.lax.iota(jnp.float32, 128)[None, :], (8, 1))
        y = pl.pallas_call(
            _probe, out_shape=jax.ShapeDtypeStruct((8, 128), jnp.float32))(x)
        _ROLL_SIGN = -1 if int(np.asarray(y)[0, 0]) == 127 else 1
    return _ROLL_SIGN


# ---------------------------------------------------------------------------
# fused Up kernel (whole folded batch in one invocation; all in VMEM)
# ---------------------------------------------------------------------------
def _up_fused_kernel(x_ref, skip_ref, ut_ref, w_ref, gb_ref, emb_ref,
                     o_ref, patch_ref, *,
                     N, Ho, Wo, cin, mid, cout, cpad, roll_sign):
    HW = Ho * Wo
    NHW = N * HW
    f32 = jnp.float32

    # lane -> (sample-local y, x) coordinates, reused by all 4 conv stages
    lane = jax.lax.broadcasted_iota(jnp.int32, (1, NHW), 1)
    rem = lane % HW
    ypos = rem // Wo
    xpos = rem - ypos * Wo

    def conv_gn(act, stage, c_out):
        """3x3 conv (pad=1, no bias) + GroupNorm(1) on a lane-flat (cpad, NHW)
        activation.  One bf16 K=9*cpad MXU contraction per stage."""
        # --- im2col via 9 masked lane-rolls -> full-width aligned stores.
        for dy in range(3):
            for dx in range(3):
                tap = dy * 3 + dx
                off = (dy - 1) * Wo + (dx - 1)
                v = act if off == 0 else pltpu.roll(
                    act, (roll_sign * off) % NHW, axis=1)
                conds = []
                if dy == 0:
                    conds.append(ypos >= 1)
                elif dy == 2:
                    conds.append(ypos < Ho - 1)
                if dx == 0:
                    conds.append(xpos >= 1)
                elif dx == 2:
                    conds.append(xpos < Wo - 1)
                if conds:           # zero halo + kill cross-sample roll wrap
                    m = conds[0]
                    for c in conds[1:]:
                        m = m & c
                    v = jnp.where(m, v, 0.0)
                patch_ref[tap * cpad:(tap + 1) * cpad, :] = v.astype(jnp.bfloat16)
        w = w_ref[stage * cpad:(stage + 1) * cpad, :]          # (cpad, 9*cpad) bf16
        y = jnp.dot(w, patch_ref[...], preferred_element_type=f32)   # (cpad, NHW)

        # --- GroupNorm(num_groups=1): per-sample, two-pass stats over the
        #     c_out real channels only (padded rows of y are exactly 0).
        g = gb_ref[:, 2 * stage:2 * stage + 1]                 # (cpad, 1), 0-padded
        b = gb_ref[:, 2 * stage + 1:2 * stage + 2]
        inv_n = 1.0 / float(c_out * HW)
        parts = []
        for n in range(N):
            yn = y[:, n * HW:(n + 1) * HW]
            yr = yn[0:c_out, :]
            mean = jnp.sum(yr) * inv_n
            d = yr - mean
            var = jnp.sum(d * d) * inv_n
            parts.append((yn - mean) * jax.lax.rsqrt(var + EPS))
        yg = parts[0] if N == 1 else jnp.concatenate(parts, axis=1)
        return yg * g + b           # padded rows: (0-mean)*rsqrt*0 + 0 == 0

    # bilinear 2x upsample (align_corners=True) as one block-diagonal matmul,
    # then torch.cat([skip, up], channel) as a sublane concat.
    up = jnp.dot(x_ref[...].astype(f32), ut_ref[...],
                 preferred_element_type=f32)                   # (Cx, NHW)
    xc = jnp.concatenate([skip_ref[...].astype(f32), up], axis=0)   # (cin, NHW)
    if cin < cpad:
        xc = jnp.concatenate([xc, jnp.zeros((cpad - cin, NHW), f32)], axis=0)

    # DoubleConv(cin, cin, residual=True): gelu(x + GN(conv(gelu(GN(conv x)))))
    h = _gelu(conv_gn(xc, 0, cin))
    h = _gelu(xc + conv_gn(h, 1, cin))
    # DoubleConv(cin, cout, mid=cin//2)
    h = _gelu(conv_gn(h, 2, mid))
    y = conv_gn(h, 3, cout)

    # + SiLU->Linear(t) time embedding, per-sample broadcast over the HW lanes
    embs = [jnp.broadcast_to(emb_ref[:, n:n + 1], (cout, HW)) for n in range(N)]
    emb_b = embs[0] if N == 1 else jnp.concatenate(embs, axis=1)
    o_ref[...] = y[0:cout, :] + emb_b


# ---------------------------------------------------------------------------
# Up.forward wrapper (NCHW in / NCHW out)
# ---------------------------------------------------------------------------
def up_forward(x, skip_x, t, p):
    """x: (N,Cx,H,W), skip_x: (N,Cs,2H,2W), t: (N, emb_dim) -> (N,Cout,2H,2W)."""
    return _up_forward_impl(x, skip_x, t, p, _roll_sign())


@functools.partial(jax.jit, static_argnums=(4,))
def _up_forward_impl(x, skip_x, t, p, roll_sign):
    N, Cx, H, W = x.shape
    _, Cs, Ho, Wo = skip_x.shape
    Cin = Cx + Cs
    mid = p["w2a"].shape[-1]
    Cout = p["w2b"].shape[-1]
    HW = Ho * Wo
    NHW = N * HW
    CPAD = _round_up(max(Cin, mid, Cout), 8)

    # Lane-flat, batch-folded layouts (cheap wrapper-side layout plumbing):
    #   x2d (Cx, N*H*W)   skip2d (Cs, N*Ho*Wo)   out (Cout, N*Ho*Wo)
    x2d = jnp.transpose(x, (1, 0, 2, 3)).reshape(Cx, N * H * W)
    sk2d = jnp.transpose(skip_x, (1, 0, 2, 3)).reshape(Cs, NHW)
    utb = _upsample_matrix_T(H, W, Ho, Wo, N)                  # (N*H*W, NHW)

    # pack the 4 conv weights into one (4*CPAD, 9*CPAD) bf16 block;
    # K layout = tap-major with per-tap channel stride CPAD (multiple of 8).
    def pack_w(w):                                             # (3,3,Ci,Co) HWIO
        ci, co = w.shape[2], w.shape[3]
        wt = jnp.transpose(w, (3, 0, 1, 2)).reshape(co, 9, ci)
        buf = jnp.zeros((CPAD, 9, CPAD), jnp.float32).at[:co, :, :ci].set(wt)
        return buf.reshape(CPAD, 9 * CPAD)

    w_all = jnp.concatenate(
        [pack_w(p["w1a"]), pack_w(p["w1b"]), pack_w(p["w2a"]), pack_w(p["w2b"])],
        axis=0).astype(jnp.bfloat16)

    # pack the 4 (gamma, beta) pairs into one (CPAD, 8) f32 block; zero padding
    # keeps padded activation channels at exactly 0 through every stage.
    def pack_gb(g, b):
        gp = jnp.zeros((CPAD,), jnp.float32).at[:g.shape[0]].set(g)
        bp = jnp.zeros((CPAD,), jnp.float32).at[:b.shape[0]].set(b)
        return jnp.stack([gp, bp], axis=1)                     # (CPAD, 2)

    gb_all = jnp.concatenate(
        [pack_gb(p["g1a"], p["b1a"]), pack_gb(p["g1b"], p["b1b"]),
         pack_gb(p["g2a"], p["b2a"]), pack_gb(p["g2b"], p["b2b"])], axis=1)

    # SiLU + Linear(t) time embedding, hoisted out of the kernel (tiny XLA op).
    emb = (t * jax.nn.sigmoid(t)) @ p["we"] + p["be"]          # (N, Cout)
    emb2d = jnp.transpose(emb).astype(jnp.float32)             # (Cout, N)

    kernel = functools.partial(
        _up_fused_kernel, N=N, Ho=Ho, Wo=Wo, cin=Cin, mid=mid, cout=Cout,
        cpad=CPAD, roll_sign=roll_sign)

    def full_spec(a):
        nd = a.ndim
        return pl.BlockSpec(a.shape, lambda i, nd=nd: (0,) * nd)

    args = (x2d, sk2d, utb, w_all, gb_all, emb2d)
    out2d = pl.pallas_call(
        kernel,
        out_shape=jax.ShapeDtypeStruct((Cout, NHW), jnp.float32),
        grid=(1,),        # whole folded batch in one step: no per-step overhead
        in_specs=[full_spec(a) for a in args],
        out_specs=pl.BlockSpec((Cout, NHW), lambda i: (0, 0)),   # lane-dense
        scratch_shapes=[pltpu.VMEM((9 * CPAD, NHW), jnp.bfloat16)],  # im2col
    )(*args)

    # lane-dense (Cout, N*HW) -> NCHW
    return jnp.transpose(out2d.reshape(Cout, N, Ho, Wo), (1, 0, 2, 3))


# ---------------------------------------------------------------------------
# pure-JAX reference (same math, XLA ops, full f32) for correctness check
# ---------------------------------------------------------------------------
def _ref_conv_gn(x, w, g, b):
    y = jax.lax.conv_general_dilated(
        x, w, window_strides=(1, 1), padding="SAME",
        dimension_numbers=("NHWC", "HWIO", "NHWC"))
    m = jnp.mean(y, axis=(1, 2, 3), keepdims=True)
    v = jnp.mean(jnp.square(y - m), axis=(1, 2, 3), keepdims=True)
    y = (y - m) / jnp.sqrt(v + EPS)
    return y * g.reshape(1, 1, 1, -1) + b.reshape(1, 1, 1, -1)


def up_forward_ref(x, skip_x, t, p):
    xh = jnp.transpose(x, (0, 2, 3, 1))
    sk = jnp.transpose(skip_x, (0, 2, 3, 1))
    N, H, W, C = xh.shape
    ah = jnp.asarray(_interp_matrix(H, 2 * H))
    aw = jnp.asarray(_interp_matrix(W, 2 * W))
    xu = jnp.einsum("ih,jw,nhwc->nijc", ah, aw, xh)
    xc = jnp.concatenate([sk, xu], axis=-1)
    h = _gelu(_ref_conv_gn(xc, p["w1a"], p["g1a"], p["b1a"]))
    h = _gelu(xc + _ref_conv_gn(h, p["w1b"], p["g1b"], p["b1b"]))
    h = _gelu(_ref_conv_gn(h, p["w2a"], p["g2a"], p["b2a"]))
    y = _ref_conv_gn(h, p["w2b"], p["g2b"], p["b2b"])
    st = t * jax.nn.sigmoid(t)
    e = st @ p["we"] + p["be"]
    y = y + e[:, None, None, :]
    return jnp.transpose(y, (0, 3, 1, 2))


if __name__ == "__main__":
    key = jax.random.PRNGKey(0)
    ks = jax.random.split(key, 20)

    # Small shapes consistent with the module: Up(in_channels=8, out_channels=4)
    N, Cx, H, W = 2, 4, 8, 8          # low-res feature map (pre-upsample)
    Cskip = 4                          # skip connection channels
    Cin = Cx + Cskip                   # = in_channels of Up = 8
    Cout = 4                           # out_channels
    mid = Cin // 2                     # = 4
    emb_dim = 32

    x = jax.random.normal(ks[0], (N, Cx, H, W), jnp.float32)
    skip_x = jax.random.normal(ks[1], (N, Cskip, 2 * H, 2 * W), jnp.float32)
    t = jax.random.normal(ks[2], (N, emb_dim), jnp.float32)

    def conv_w(k, ci, co):
        return 0.2 * jax.random.normal(k, (3, 3, ci, co), jnp.float32)

    params = {
        # DoubleConv(Cin, Cin, residual=True)
        "w1a": conv_w(ks[3], Cin, Cin),
        "g1a": 1.0 + 0.1 * jax.random.normal(ks[4], (Cin,), jnp.float32),
        "b1a": 0.1 * jax.random.normal(ks[5], (Cin,), jnp.float32),
        "w1b": conv_w(ks[6], Cin, Cin),
        "g1b": 1.0 + 0.1 * jax.random.normal(ks[7], (Cin,), jnp.float32),
        "b1b": 0.1 * jax.random.normal(ks[8], (Cin,), jnp.float32),
        # DoubleConv(Cin, Cout, mid=Cin//2)
        "w2a": conv_w(ks[9], Cin, mid),
        "g2a": 1.0 + 0.1 * jax.random.normal(ks[10], (mid,), jnp.float32),
        "b2a": 0.1 * jax.random.normal(ks[11], (mid,), jnp.float32),
        "w2b": conv_w(ks[12], mid, Cout),
        "g2b": 1.0 + 0.1 * jax.random.normal(ks[13], (Cout,), jnp.float32),
        "b2b": 0.1 * jax.random.normal(ks[14], (Cout,), jnp.float32),
        # emb_layer: Linear(emb_dim, Cout)
        "we": 0.2 * jax.random.normal(ks[15], (emb_dim, Cout), jnp.float32),
        "be": 0.1 * jax.random.normal(ks[16], (Cout,), jnp.float32),
    }

    out = jax.block_until_ready(up_forward(x, skip_x, t, params))
    ref = jax.block_until_ready(up_forward_ref(x, skip_x, t, params))

    assert out.shape == (N, Cout, 2 * H, 2 * W), out.shape
    # Tolerance accounts for bf16 MXU operands (conv weights + im2col patches)
    # vs. the pure-f32 XLA reference; real layout/tap/stat bugs produce O(1)
    # errors, far above this bound.
    np.testing.assert_allclose(np.asarray(out), np.asarray(ref),
                               rtol=5e-2, atol=5e-2)
    print("KERNEL_OK")
</pallas_src>

<mosaic_0001>
module attributes {stable_mosaic.version = 11 : i64} {
  func.func @_probe(%arg0: memref<8x128xf32, #tpu.memory_space<vmem>>, %arg1: memref<8x128xf32, #tpu.memory_space<vmem>>) attributes {dimension_semantics = [], scalar_prefetch = 0 : i64, scratch_operands = 0 : i64, tpu.core_type = #tpu.core_type<tc>} {
    %c0 = arith.constant 0 : index
    %c0_0 = arith.constant 0 : index
    %0 = vector.load %arg0[%c0, %c0_0] : memref<8x128xf32, #tpu.memory_space<vmem>>, vector<8x128xf32>
    %c1_i32 = arith.constant 1 : i32
    %1 = tpu.dynamic_rotate %0 by %c1_i32 dim 1 : vector<8x128xf32>, i32 -> vector<8x128xf32>
    %c0_1 = arith.constant 0 : index
    %c0_2 = arith.constant 0 : index
    %2 = vector.load %arg1[%c0_1, %c0_2] : memref<8x128xf32, #tpu.memory_space<vmem>>, vector<8x128xf32>
    tpu.vector_store %arg1[%c0_1, %c0_2], %1 {strides = array<i32>} : memref<8x128xf32, #tpu.memory_space<vmem>>, vector<8x128xf32>,
    return
  }
}

</mosaic_0001>

<bundles_post_ra>
// kernel: tpu_custom_call.1
= control target key start
LH: loop header
LB: loop body
LE: loop exit
PB: predicated region body
PF: predicated region fallthrough
CT: control target
= control target key end

     0   :  { %6 = vsyncpa [#allocation3], 0  ;;  %s106_s0 = inlined_call_operand.hbm [shape: f32[8,128], index: 0, kind: input, shape index: {}]   ;;  %s107_s1 = inlined_call_operand.hbm [shape: f32[8,128], index: 1, kind: output, shape index: {}]  }
   0x1   :  { %7 = vsyncpa [#allocation4], 0  ;;  %s87_s6 = smov [#allocation2]  }
   0x2   :  { %s14_s7 = sshll.u32 %s87_s6, 4  ;;  %s15_s7 = int_to_ptr.vmem [resolvable:$true] %s14_s7 }
   0x3   :  { %s51_s8 = scalar_lea.vmem %s15_s7, 128  ;;  %p56_p1 = scmp.lt.s32.totalorder %s15_s7, %s15_s7 }
   0x4   :  { %p52_p0 = scmp.ne.s32.totalorder %s15_s7, %s51_s8  ;;  %p57_p2 = scmp.lt.s32.totalorder %s51_s8, %s51_s8 }
   0x6   :  { %p58_p3 = por %p57_p2, %p56_p1 }
   0x8   :  { %p59_p4 = pnand %p58_p3, %p52_p0 }
   0xa   :  { %62 = shalt.err (!%p59_p4)
}
   0xb   :  { %17 = dma.hbm_to_vmem [thread:$0]  %s106_s0, 128, %s15_s7, [#allocation3]  }
   0xc   :  { %83 = dma.done.wait [#allocation3], 128  }
   0xd   :  { %84 = vsyncadd [#allocation3], 4294967168  ;;  %v21_v0 = vld [vmem:[#allocation2] sm:$0xff]  ;;  %s88_s11 = smov 1   ;;  %s89_s12 = smov [#allocation5]  }
   0xe   :  { %22 = vrot.lane.b32.xlu0 %v21_v0, %s88_s11  ;;  %s31_s13 = sshll.u32 %s89_s12, 4  ;;  %s32_s13 = int_to_ptr.vmem [resolvable:$true] %s31_s13 }
   0xf   :  { %s63_s14 = scalar_lea.vmem %s32_s13, 128  ;;  %p68_p6 = scmp.lt.s32.totalorder %s32_s13, %s32_s13 }
  0x10   :  { %p64_p5 = scmp.ne.s32.totalorder %s32_s13, %s63_s14  ;;  %p69_p7 = scmp.lt.s32.totalorder %s63_s14, %s63_s14 }
  0x12   :  { %p70_p8 = por %p69_p7, %p68_p6 }
  0x14   :  { %p71_p9 = pnand %p70_p8, %p64_p5 }
  0x80   :  { %v23_v1 = vpop.permute.xlu0 %22 }
  0x81   :  { %24 = vst [vmem:[#allocation5] sm:$0xff] %v23_v1 }
  0x82   :  { %74 = shalt.err (!%p71_p9)
}
  0x83   :  { %34 = dma.vmem_to_hbm [thread:$0]  %s32_s13, 128, %s107_s1, [#allocation4]  }
  0x84   :  { %85 = dma.done.wait [#allocation4], 128  }
  0x85   :  { %86 = vsyncadd [#allocation4], 4294967168 }
  0x86   :  { %38 = vsyncpa [#allocation3], 1 }
  0x87   :  { %39 = vsyncpa [#allocation4], 1 }

</bundles_post_ra>
